<compile_context>
chip_gen: v5e
topology: v5e:2x2
jax: 0.10.0
libtpu: 0.0.40
codegen_flags: <defaults>
</compile_context>

<pallas_src>
import functools
import numpy as np
import jax
import jax.numpy as jnp
from jax import lax
from jax.experimental import pallas as pl
from jax.experimental.pallas import tpu as pltpu

_VMEM_LIMIT_BYTES = 64 * 1024 * 1024    # explicit Mosaic scoped-VMEM limit
_VMEM_BUDGET_BYTES = 24 * 1024 * 1024   # target working set when picking the time chunk
_MAX_TL = 128                           # time-chunk cap (recurrence fully unrolled)


def _round_up(x, m):
    return ((x + m - 1) // m) * m


def _gelu(x):
    # TODO(synk): PyTorch F.gelu defaults to the exact erf form; this is the tanh
    # approximation (used identically in the in-file reference), |err| <~ 1e-3.
    c = jnp.float32(0.7978845608028654)  # sqrt(2/pi)
    return 0.5 * x * (1.0 + jnp.tanh(c * (x + 0.044715 * x * x * x)))


def _const_spec(shape):
    # Grid-invariant operand (weights / bias): constant index map -> DMA'd once.
    # TODO(synk): single-buffer these with pipeline_mode=pl.Buffered(1) to reclaim
    # the second VMEM buffer once that path is exercised on all target gens.
    return pl.BlockSpec(shape, lambda *_: (0,) * len(shape))


# ----------------------------------- encoder -----------------------------------

def _encoder_kernel(x_ref, wt_ref, b_ref, o_ref):
    # x_ref: (tl, Bp, d_in); wt_ref: (d_in, Hp) bf16; b_ref: (1, Hp); o_ref: (tl, Bp, Hp)
    tl, bp, fin = x_ref.shape
    hp = o_ref.shape[-1]
    x2 = x_ref[...].reshape(tl * bp, fin).astype(jnp.bfloat16)
    y = jnp.dot(x2, wt_ref[...], preferred_element_type=jnp.float32) + b_ref[...]
    o_ref[...] = y.reshape(tl, bp, hp)


def encode(x3, wt_bf16, b2, *, tl):
    Lp, Bp, Fin = x3.shape
    Hp = wt_bf16.shape[1]
    return pl.pallas_call(
        _encoder_kernel,
        out_shape=jax.ShapeDtypeStruct((Lp, Bp, Hp), jnp.float32),
        grid=(Lp // tl,),
        in_specs=[
            pl.BlockSpec((tl, Bp, Fin), lambda c: (c, 0, 0)),
            _const_spec((Fin, Hp)),
            _const_spec((1, Hp)),
        ],
        out_specs=pl.BlockSpec((tl, Bp, Hp), lambda c: (c, 0, 0)),
        compiler_params=pltpu.CompilerParams(
            dimension_semantics=("parallel",),
            vmem_limit_bytes=_VMEM_LIMIT_BYTES),
    )(x3, wt_bf16, b2)


# ------------------------------ S5 sequence layer -------------------------------

def _s5_layer_kernel(x_ref, xn_ref, lam_re_ref, lam_im_ref, bstk_ref, cstk_ref,
                     d_ref, out_ref, sre_ref, sim_ref, bu_a_ref, bu_b_ref, st_ref):
    # x_ref / xn_ref / out_ref: (tl, bs, Hp)  current / next time chunk of one batch shard
    # lam_re / lam_im:          (1, Pp)       Re/Im of Lambda_bar
    # bstk:                     (Hp, 2Pp) bf16  [B_re^T | B_im^T]
    # cstk:                     (2Pp, Hp) bf16  [[C_re^T], [-C_im^T]]
    # d:                        (1, Hp)
    # sre/sim:                  (bs, Pp)      carried SSM state (persists across chunks)
    # bu_a/bu_b:                (rows, 2Pp)   ping-pong Bu buffers (rows = tl*bs)
    # st:                       (rows, 2Pp)   per-chunk state history (feeds C matmul)
    tl, bs, hp = x_ref.shape
    pp = lam_re_ref.shape[1]
    rows = tl * bs
    c = pl.program_id(1)

    @pl.when(c == 0)
    def _():
        # New batch shard: reset the carried SSM state and prime Bu for chunk 0.
        sre_ref[...] = jnp.zeros_like(sre_ref)
        sim_ref[...] = jnp.zeros_like(sim_ref)
        bu_a_ref[...] = jnp.dot(
            x_ref[...].reshape(rows, hp).astype(jnp.bfloat16), bstk_ref[...],
            preferred_element_type=jnp.float32)

    lo = pl.ds(0, pp)
    hi = pl.ds(pp, pp)

    def chunk_body(bu_cur_ref, bu_nxt_ref):
        # (1) Skewed input projection: Bu for the *next* chunk goes into the other
        # (statically distinct) buffer, so this MXU matmul is provably independent
        # of the serial VPU recurrence below and the two overlap in the VLIW.
        bu_nxt_ref[...] = jnp.dot(
            xn_ref[...].reshape(rows, hp).astype(jnp.bfloat16), bstk_ref[...],
            preferred_element_type=jnp.float32)

        # (2) Roll-free radix-2 diagonal complex recurrence (pure VPU).
        # Hoisted broadcasts (JAX does not CSE broadcast_in_dim) and Lambda^2.
        lr = jnp.broadcast_to(lam_re_ref[...], (bs, pp))
        li = jnp.broadcast_to(lam_im_ref[...], (bs, pp))
        lr2 = lr * lr - li * li
        li2 = 2.0 * lr * li

        def pair_step(r0, r1, s_re, s_im):
            # Covers two timesteps; only the x1 update is on the serial critical
            # path (c_* and x0_* are independent filler work for the scheduler).
            b0_re = bu_cur_ref[r0, lo]
            b0_im = bu_cur_ref[r0, hi]
            b1_re = bu_cur_ref[r1, lo]
            b1_im = bu_cur_ref[r1, hi]
            c_re = lr * b0_re - li * b0_im + b1_re            # Lambda*b0 + b1
            c_im = lr * b0_im + li * b0_re + b1_im
            x0_re = lr * s_re - li * s_im + b0_re             # state at t = 2j
            x0_im = lr * s_im + li * s_re + b0_im
            x1_re = lr2 * s_re - li2 * s_im + c_re            # state at t = 2j+1
            x1_im = lr2 * s_im + li2 * s_re + c_im
            st_ref[r0, lo] = x0_re
            st_ref[r0, hi] = x0_im
            st_ref[r1, lo] = x1_re
            st_ref[r1, hi] = x1_im
            return x1_re, x1_im

        n_pairs = tl // 2
        s_re = sre_ref[...]
        s_im = sim_ref[...]
        if n_pairs <= 64:                      # full unroll: LLO sees the whole chain
            for j in range(n_pairs):
                r0 = pl.ds((2 * j) * bs, bs)
                r1 = pl.ds((2 * j + 1) * bs, bs)
                s_re, s_im = pair_step(r0, r1, s_re, s_im)
        else:                                  # fallback for very long chunks
            def body(j, carry):
                base = pl.multiple_of(j * (2 * bs), bs)
                return pair_step(pl.ds(base, bs), pl.ds(base + bs, bs), *carry)
            s_re, s_im = lax.fori_loop(0, n_pairs, body, (s_re, s_im), unroll=8)
        sre_ref[...] = s_re
        sim_ref[...] = s_im

        # (3) Hoisted output projection + SequenceLayer epilogue:
        # y = Re(C x) + D*u ; out = u + gelu(y).  (Defaults: prenorm=False and
        # batchnorm=False => the module's LayerNorm is never applied; dropout=0.)
        u = x_ref[...].reshape(rows, hp)
        y = jnp.dot(st_ref[...].astype(jnp.bfloat16), cstk_ref[...],
                    preferred_element_type=jnp.float32)
        y = y + d_ref[...] * u
        out_ref[...] = (u + _gelu(y)).reshape(tl, bs, hp)

    parity = c & 1

    @pl.when(parity == 0)
    def _():
        chunk_body(bu_a_ref, bu_b_ref)

    @pl.when(parity == 1)
    def _():
        chunk_body(bu_b_ref, bu_a_ref)


def s5_layer(h3, lam_re, lam_im, bstk, cstk, dvec, *, tl, bs):
    """One SequenceLayer (S5 SSM + gelu + residual) on the (Lp, Bp, Hp) slab."""
    Lp, Bp, Hp = h3.shape
    Pp = lam_re.shape[1]
    P2 = 2 * Pp
    n_chunks = Lp // tl
    n_shards = Bp // bs
    rows = tl * bs
    return pl.pallas_call(
        _s5_layer_kernel,
        out_shape=jax.ShapeDtypeStruct((Lp, Bp, Hp), jnp.float32),
        grid=(n_shards, n_chunks),
        in_specs=[
            pl.BlockSpec((tl, bs, Hp), lambda s, c: (c, s, 0)),
            pl.BlockSpec((tl, bs, Hp),
                         lambda s, c: (jnp.minimum(c + 1, n_chunks - 1), s, 0)),
            _const_spec((1, Pp)),
            _const_spec((1, Pp)),
            _const_spec((Hp, P2)),
            _const_spec((P2, Hp)),
            _const_spec((1, Hp)),
        ],
        out_specs=pl.BlockSpec((tl, bs, Hp), lambda s, c: (c, s, 0)),
        scratch_shapes=[
            pltpu.VMEM((bs, Pp), jnp.float32),      # carried state (real)
            pltpu.VMEM((bs, Pp), jnp.float32),      # carried state (imag)
            pltpu.VMEM((rows, P2), jnp.float32),    # Bu ping buffer
            pltpu.VMEM((rows, P2), jnp.float32),    # Bu pong buffer
            pltpu.VMEM((rows, P2), jnp.float32),    # per-chunk state history
        ],
        compiler_params=pltpu.CompilerParams(
            dimension_semantics=("parallel", "arbitrary"),
            vmem_limit_bytes=_VMEM_LIMIT_BYTES),
    )(h3, h3, lam_re, lam_im, bstk, cstk, dvec)


# --------------------------- mean over time + decoder ---------------------------

def _mean_decode_kernel(x_ref, wt_ref, b_ref, o_ref, acc_ref, *, seq_len):
    # x_ref: (tl, Bp, Hp) chunk; acc_ref: (Bp, Hp) running sum; o_ref: (Bp, Doutp)
    c = pl.program_id(0)
    tl = x_ref.shape[0]

    @pl.when(c == 0)
    def _():
        acc_ref[...] = jnp.zeros_like(acc_ref)

    start = c * tl

    @pl.when(start + tl <= seq_len)            # fully valid chunk: plain accumulate
    def _():
        acc_ref[...] += jnp.sum(x_ref[...], axis=0)

    @pl.when(start + tl > seq_len)             # only the boundary chunk pays for masking
    def _():
        t_idx = lax.broadcasted_iota(jnp.int32, (tl, 1, 1), 0) + start
        acc_ref[...] += jnp.sum(
            jnp.where(t_idx < seq_len, x_ref[...], jnp.float32(0.0)), axis=0)

    @pl.when(c == pl.num_programs(0) - 1)
    def _():
        pooled = acc_ref[...] * jnp.float32(1.0 / seq_len)
        o_ref[...] = (jnp.dot(pooled, wt_ref[...],
                              preferred_element_type=jnp.float32) + b_ref[...])


def mean_decode(h3, wt, b2, *, seq_len, tl):
    Lp, Bp, Hp = h3.shape
    Doutp = wt.shape[1]
    kernel = functools.partial(_mean_decode_kernel, seq_len=seq_len)
    return pl.pallas_call(
        kernel,
        out_shape=jax.ShapeDtypeStruct((Bp, Doutp), jnp.float32),
        grid=(Lp // tl,),
        in_specs=[
            pl.BlockSpec((tl, Bp, Hp), lambda c: (c, 0, 0)),
            _const_spec((Hp, Doutp)),
            _const_spec((1, Doutp)),
        ],
        out_specs=pl.BlockSpec((Bp, Doutp), lambda c: (0, 0)),
        scratch_shapes=[pltpu.VMEM((Bp, Hp), jnp.float32)],
        compiler_params=pltpu.CompilerParams(
            dimension_semantics=("arbitrary",),
            vmem_limit_bytes=_VMEM_LIMIT_BYTES),
    )(h3, wt, b2)


# ------------------------------ parameters / glue --------------------------------

def init_params(key, d_input, d_output, d_model, ssm_size, n_layers,
                dt_min=1e-3, dt_max=1e-1):
    ks = jax.random.split(key, 2 + n_layers)

    def linear_init(k, fan_out, fan_in):
        kw, kb = jax.random.split(k)
        bound = 1.0 / np.sqrt(fan_in)
        w = jax.random.uniform(kw, (fan_out, fan_in), jnp.float32, -bound, bound)
        b = jax.random.uniform(kb, (fan_out,), jnp.float32, -bound, bound)
        return w, b

    enc_w, enc_b = linear_init(ks[0], d_model, d_input)
    dec_w, dec_b = linear_init(ks[1], d_output, d_model)

    P, H = ssm_size, d_model
    layers = []
    for i in range(n_layers):
        lk = jax.random.split(ks[2 + i], 6)
        # Stable diagonal (Re < 0 => |Lambda_bar| < 1 after bilinear discretization).
        Lambda = (-0.5 * jnp.ones((P,), jnp.float32)
                  + 1j * jnp.pi * jnp.arange(P, dtype=jnp.float32)).astype(jnp.complex64)
        log_step = jax.random.uniform(lk[0], (P,), jnp.float32,
                                      float(np.log(dt_min)), float(np.log(dt_max)))
        B_t = ((jax.random.normal(lk[1], (P, H)) + 1j * jax.random.normal(lk[2], (P, H)))
               * np.sqrt(0.5 / H)).astype(jnp.complex64)
        C = ((jax.random.normal(lk[3], (H, P)) + 1j * jax.random.normal(lk[4], (H, P)))
             * np.sqrt(0.5 / P)).astype(jnp.complex64)       # C_init='complex_normal'
        D = jax.random.normal(lk[5], (H,), jnp.float32)
        layers.append(dict(Lambda=Lambda, log_step=log_step, B=B_t, C=C, D=D))
    return dict(enc_w=enc_w, enc_b=enc_b, dec_w=dec_w, dec_b=dec_b, layers=layers)


def discretize_bilinear(Lambda, B_tilde, log_step, step_rescale=1.0):
    dt = (step_rescale * jnp.exp(log_step)).astype(jnp.complex64)
    BL = 1.0 / (1.0 - (dt / 2.0) * Lambda)
    Lambda_bar = BL * (1.0 + (dt / 2.0) * Lambda)
    B_bar = (BL * dt)[:, None] * B_tilde
    return Lambda_bar, B_bar


def prepare_params(params):
    """Build all padded / stacked / bf16 parameter slabs ONCE (input-independent)."""
    enc_w = jnp.asarray(params["enc_w"], jnp.float32)
    enc_b = jnp.asarray(params["enc_b"], jnp.float32)
    dec_w = jnp.asarray(params["dec_w"], jnp.float32)
    dec_b = jnp.asarray(params["dec_b"], jnp.float32)
    H, d_in = enc_w.shape
    Dout = dec_w.shape[0]
    P = params["layers"][0]["Lambda"].shape[0]
    Hp = _round_up(H, 128)
    Pp = _round_up(P, 128)
    Doutp = _round_up(Dout, 128)

    enc_wt = (jnp.zeros((d_in, Hp), jnp.float32)
              .at[:, :H].set(enc_w.T)).astype(jnp.bfloat16)
    enc_b2 = jnp.zeros((1, Hp), jnp.float32).at[0, :H].set(enc_b)
    dec_wt = jnp.zeros((Hp, Doutp), jnp.float32).at[:H, :Dout].set(dec_w.T)
    dec_b2 = jnp.zeros((1, Doutp), jnp.float32).at[0, :Dout].set(dec_b)

    layers = []
    for lp in params["layers"]:
        Lb, Bb = discretize_bilinear(lp["Lambda"], lp["B"], lp["log_step"])
        lam_re = (jnp.zeros((1, Pp), jnp.float32)
                  .at[0, :P].set(jnp.real(Lb).astype(jnp.float32)))
        lam_im = (jnp.zeros((1, Pp), jnp.float32)
                  .at[0, :P].set(jnp.imag(Lb).astype(jnp.float32)))
        bstk = (jnp.zeros((Hp, 2 * Pp), jnp.float32)
                .at[:H, :P].set(jnp.real(Bb).T.astype(jnp.float32))
                .at[:H, Pp:Pp + P].set(jnp.imag(Bb).T.astype(jnp.float32))
                ).astype(jnp.bfloat16)
        cstk = (jnp.zeros((2 * Pp, Hp), jnp.float32)
                .at[:P, :H].set(jnp.real(lp["C"]).T.astype(jnp.float32))
                .at[Pp:Pp + P, :H].set(-jnp.imag(lp["C"]).T.astype(jnp.float32))
                ).astype(jnp.bfloat16)
        dvec = jnp.zeros((1, Hp), jnp.float32).at[0, :H].set(
            jnp.asarray(lp["D"], jnp.float32))
        layers.append(dict(lam_re=lam_re, lam_im=lam_im, bstk=bstk, cstk=cstk, dvec=dvec))

    return dict(enc_wt=enc_wt, enc_b=enc_b2, dec_wt=dec_wt, dec_b=dec_b2,
                layers=layers, Hp=Hp, Pp=Pp, d_in=d_in, d_output=Dout)


def _pick_tl(L, bs, Hp, P2):
    """Largest time chunk (<= _MAX_TL) whose layer-kernel working set fits the budget."""
    tl = min(_MAX_TL, _round_up(L, 8))

    def layer_bytes(t):
        rows = t * bs
        x_in = 4 * rows * Hp * 4              # current + next-chunk specs, double-buffered
        out = 2 * rows * Hp * 4               # double-buffered output block
        scratch = 3 * rows * P2 * 4           # two Bu buffers + state history
        wts = 2 * 2 * (Hp * P2 * 2)           # bstk + cstk, bf16, double-buffered
        return x_in + out + scratch + wts

    while tl > 8 and layer_bytes(tl) > _VMEM_BUDGET_BYTES:
        tl -= 8
    return tl


def s5_model_forward(x_bld, prep):
    """Pallas forward. x_bld: (B, L, d_input) -> (B, d_output)."""
    B, L, d_in = x_bld.shape
    assert d_in == prep["d_in"]
    Hp, Pp = prep["Hp"], prep["Pp"]

    Bp = _round_up(B, 8)
    bs = 8 if Bp >= 16 else Bp              # batch shard (>=8 sublanes) -> 2 TCs on v7x
    tl = _pick_tl(L, bs, Hp, 2 * Pp)
    Lp = _round_up(L, tl)

    # Time-major zero-padded slab (Lp, Bp, d_in): lane = features, sublane = batch.
    x_t = jnp.transpose(x_bld, (1, 0, 2)).astype(jnp.float32)
    x_pad = jnp.zeros((Lp, Bp, d_in), jnp.float32).at[:L, :B, :].set(x_t)

    h = encode(x_pad, prep["enc_wt"], prep["enc_b"], tl=tl)
    for layer in prep["layers"]:
        h = s5_layer(h, layer["lam_re"], layer["lam_im"], layer["bstk"],
                     layer["cstk"], layer["dvec"], tl=tl, bs=bs)

    out_p = mean_decode(h, prep["dec_wt"], prep["dec_b"], seq_len=L, tl=tl)
    return out_p[:B, :prep["d_output"]]


# ------------------------------- pure-JAX reference ------------------------------

def ref_forward(x_bld, params):
    h = x_bld @ params["enc_w"].T + params["enc_b"]
    B = x_bld.shape[0]
    for lp in params["layers"]:
        Lb, Bb = discretize_bilinear(lp["Lambda"], lp["B"], lp["log_step"])
        P = Lb.shape[0]
        state = jnp.zeros((B, P), jnp.complex64)
        Bu = jnp.einsum("blh,ph->blp", h.astype(jnp.complex64), Bb)

        def step(s, inp, Lb=Lb, C=lp["C"], D=lp["D"]):
            bu_t, u_t = inp
            s = Lb[None, :] * s + bu_t
            y = jnp.real(s @ C.T) + D[None, :] * u_t
            return s, u_t + _gelu(y)

        _, outs = lax.scan(step, state, (jnp.transpose(Bu, (1, 0, 2)),
                                         jnp.transpose(h, (1, 0, 2))))
        h = jnp.transpose(outs, (1, 0, 2))
    pooled = h.mean(axis=1)
    return pooled @ params["dec_w"].T + params["dec_b"]


if __name__ == "__main__":
    # Small shapes consistent with S5Model.forward: x is (B, L, d_input).
    B, L, d_input, d_output = 2, 8, 4, 10
    d_model, ssm_size, n_layers = 32, 16, 2

    key = jax.random.PRNGKey(0)
    kp, kx = jax.random.split(key)
    params = init_params(kp, d_input, d_output, d_model, ssm_size, n_layers)
    prep = prepare_params(params)                  # parameter slabs built once
    x = jax.random.normal(kx, (B, L, d_input), jnp.float32)

    out = jax.block_until_ready(s5_model_forward(x, prep))
    assert out.shape == (B, d_output), out.shape

    ref = jax.block_until_ready(ref_forward(x, params))
    assert bool(jnp.allclose(out, ref, rtol=5e-2, atol=5e-2)), (out, ref)

    print("KERNEL_OK")
</pallas_src>

<mosaic_0001>
module attributes {stable_mosaic.version = 11 : i64} {
  func.func @_encoder_kernel(%arg0: i32, %arg1: memref<8x8x4xf32, #tpu.memory_space<vmem>>, %arg2: memref<4x128xbf16, #tpu.memory_space<vmem>>, %arg3: memref<1x128xf32, #tpu.memory_space<vmem>>, %arg4: memref<8x8x128xf32, #tpu.memory_space<vmem>>) attributes {dimension_semantics = [#tpu.dimension_semantics<parallel>], iteration_bounds = array<i64: 1>, scalar_prefetch = 0 : i64, scratch_operands = 0 : i64, tpu.core_type = #tpu.core_type<tc>, window_params = [{transform_indices = @transform_0, window_bounds = array<i64: 8, 8, 4>}, {pipeline_mode = #tpu.pipeline_mode<synchronous>, transform_indices = @transform_1, window_bounds = array<i64: 4, 128>}, {pipeline_mode = #tpu.pipeline_mode<synchronous>, transform_indices = @transform_2, window_bounds = array<i64: 1, 128>}, {transform_indices = @transform_3, window_bounds = array<i64: 8, 8, 128>}]} {
    %c0 = arith.constant 0 : index
    %c0_0 = arith.constant 0 : index
    %c0_1 = arith.constant 0 : index
    %0 = vector.load %arg1[%c0, %c0_0, %c0_1] : memref<8x8x4xf32, #tpu.memory_space<vmem>>, vector<8x8x4xf32>
    %1 = vector.shape_cast %0 : vector<8x8x4xf32> to vector<64x4xf32>
    %2 = arith.truncf %1 : vector<64x4xf32> to vector<64x4xbf16>
    %c0_2 = arith.constant 0 : index
    %c0_3 = arith.constant 0 : index
    %3 = vector.load %arg2[%c0_2, %c0_3] : memref<4x128xbf16, #tpu.memory_space<vmem>>, vector<4x128xbf16>
    %cst = arith.constant dense<0.000000e+00> : vector<64x128xf32>
    %4 = tpu.matmul %2, %3, %cst {dimension_numbers = #tpu.dot_dimension_numbers<[1], [0], [0], [1], [0, 0, 1, 1], [], []>} : vector<64x4xbf16>, vector<4x128xbf16>, vector<64x128xf32> -> vector<64x128xf32>
    %c0_4 = arith.constant 0 : index
    %c0_5 = arith.constant 0 : index
    %5 = vector.load %arg3[%c0_4, %c0_5] : memref<1x128xf32, #tpu.memory_space<vmem>>, vector<1x128xf32>
    %6 = vector.broadcast %5 : vector<1x128xf32> to vector<64x128xf32>
    %7 = arith.addf %4, %6 : vector<64x128xf32>
    %8 = vector.shape_cast %7 : vector<64x128xf32> to vector<8x8x128xf32>
    %c0_6 = arith.constant 0 : index
    %c0_7 = arith.constant 0 : index
    %c0_8 = arith.constant 0 : index
    %9 = vector.load %arg4[%c0_6, %c0_7, %c0_8] : memref<8x8x128xf32, #tpu.memory_space<vmem>>, vector<8x8x128xf32>
    tpu.vector_store %arg4[%c0_6, %c0_7, %c0_8], %8 {strides = array<i32>} : memref<8x8x128xf32, #tpu.memory_space<vmem>>, vector<8x8x128xf32>,
    return
  }
  func.func @transform_0(%arg0: i32) -> (i32, i32, i32) {
    %c0_i32 = arith.constant 0 : i32
    %c0_i32_0 = arith.constant 0 : i32
    %c0_i32_1 = arith.constant 0 : i32
    return %arg0, %c0_i32, %c0_i32_0 : i32, i32, i32
  }
  func.func @transform_1(%arg0: i32) -> (i32, i32) {
    %c0_i32 = arith.constant 0 : i32
    %c0_i32_0 = arith.constant 0 : i32
    %c0_i32_1 = arith.constant 0 : i32
    return %c0_i32, %c0_i32_0 : i32, i32
  }
  func.func @transform_2(%arg0: i32) -> (i32, i32) {
    %c0_i32 = arith.constant 0 : i32
    %c0_i32_0 = arith.constant 0 : i32
    %c0_i32_1 = arith.constant 0 : i32
    return %c0_i32, %c0_i32_0 : i32, i32
  }
  func.func @transform_3(%arg0: i32) -> (i32, i32, i32) {
    %c0_i32 = arith.constant 0 : i32
    %c0_i32_0 = arith.constant 0 : i32
    %c0_i32_1 = arith.constant 0 : i32
    return %arg0, %c0_i32, %c0_i32_0 : i32, i32, i32
  }
}

</mosaic_0001>

<bundles_post_ra>
// kernel: tpu_custom_call.1
= control target key start
LH: loop header
LB: loop body
LE: loop exit
PB: predicated region body
PF: predicated region fallthrough
CT: control target
= control target key end

     0   :  { %vm46_vm0 = vcmask 1041408   ;;  %vm33_vm1 = vcmask 31744   ;;  %s198_s0 = inlined_call_operand.vmem [shape: f32[8,8,4], index: 0, kind: input, shape index: {}]   ;;  %s199_s1 = inlined_call_operand.vmem [shape: bf16[4,128], index: 1, kind: input, shape index: {}]   ;;  %s200_s2 = inlined_call_operand.vmem [shape: f32[1,128], index: 2, kind: input, shape index: {}]   ;;  %s201_s3 = inlined_call_operand.hbm [shape: f32[8,8,128], index: 3, kind: output, shape index: {}]  }
   0x1   :  { %v28_v0 = vld [vmem:[%s199_s1] sm:$0x3]  ;;  %v17_v2 = vld [vmem:[%s198_s0 + $0x8] sm:$0xff]  ;;  %v18_v5 = vld [vmem:[%s198_s0 + $0x10] sm:$0xff] }
   0x2   :  { %v16_v1 = vld [vmem:[%s198_s0] sm:$0xff]  ;;  %v48_v3 = vsel %vm46_vm0, %v28_v0, 0  ;;  %v19_v6 = vld [vmem:[%s198_s0 + $0x18] sm:$0xff]  ;;  %v21_v9 = vld [vmem:[%s198_s0 + $0x28] sm:$0xff] }
   0x3   :  { %v24_v4 = vpack.c.bf16 %v17_v2, %v16_v1  ;;  %v20_v7 = vld [vmem:[%s198_s0 + $0x20] sm:$0xff]  ;;  %57 = vmatpush.bf16.msra.mxu0 %v48_v3  ;;  %109 = vmatpush.bf16.msra.mxu1 %v48_v3  ;;  %v25_v8 = vpack.c.bf16 %v19_v6, %v18_v5  ;;  %v22_v10 = vld [vmem:[%s198_s0 + $0x30] sm:$0xff]  ;;  %v23_v11 = vld [vmem:[%s198_s0 + $0x38] sm:$0xff] }
   0x4   :  { %110 = vmatpush.bf16.msra.mxu2 %v48_v3  ;;  %111 = vmatpush.bf16.msra.mxu3 %v48_v3  ;;  %v26_v12 = vpack.c.bf16 %v21_v9, %v20_v7  ;;  %v27_v13 = vpack.c.bf16 %v23_v11, %v22_v10 }
   0x5   :  { %8 = vsyncpa [#allocation3], 0  ;;  %v115_v14 = vld [vmem:[%s200_s2] ss:$0 sm:$0xff]  ;;  %s142_s0 = smov [#allocation2]   ;;  %s93_s6 = sshll.u32 %s201_s3, 4  ;;  %s94_s6 = int_to_ptr.hbm [resolvable:$true] %s93_s6 }
   0x6   :  { %105 = vmatmul.msk.bf16.vlgmr.msra.gmra.mxu0 %vm33_vm1, %v24_v4  ;;  %106 = vmatmul.msk.bf16.vlgmr.msra.gmra.mxu1 %vm33_vm1, %v25_v8  ;;  %s91_s2 = sshll.u32 %s142_s0, 4  ;;  %s143_s7 = smov 128   ;;  %s92_s2 = int_to_ptr.vmem [resolvable:$true] %s91_s2 }
   0x7   :  { %107 = vmatmul.msk.bf16.vlgmr.msra.gmra.mxu2 %vm33_vm1, %v26_v12  ;;  %108 = vmatmul.msk.bf16.vlgmr.msra.gmra.mxu3 %vm33_vm1, %v27_v13  ;;  %s144_s8 = smov 8  }
  0x83   :  { %v59_v15 = vpop.f32.mrf.mxu0  ;;  %v64_v16 = vpop.f32.mrf.mxu1 }
  0x84   :  { %v60_v17 = vadd.f32 %v115_v14, %v59_v15  ;;  %v65_v18 = vadd.f32 %v115_v14, %v64_v16 }
  0x86   :  { %79 = vst [vmem:[#allocation2] sm:$0xff] %v60_v17 }
  0x87   :  { %81 = vst [vmem:[#allocation2 + $0x10] sm:$0xff] %v65_v18 }
  0x8a   :  { %v69_v19 = vpop.f32.mrf.mxu2  ;;  %v74_v20 = vpop.f32.mrf.mxu3 }
  0x8b   :  { %v70_v21 = vadd.f32 %v115_v14, %v69_v19  ;;  %v75_v22 = vadd.f32 %v115_v14, %v74_v20  ;;  %v61_v23 = vpop.f32.mrf.mxu0  ;;  %v66_v24 = vpop.f32.mrf.mxu1 }
  0x8c   :  { %v62_v25 = vadd.f32 %v115_v14, %v61_v23  ;;  %v67_v26 = vadd.f32 %v115_v14, %v66_v24 }
  0x8d   :  { %83 = vst [vmem:[#allocation2 + $0x20] sm:$0xff] %v70_v21 }
  0x8e   :  { %85 = vst [vmem:[#allocation2 + $0x30] sm:$0xff] %v75_v22 }
  0x8f   :  { %80 = vst [vmem:[#allocation2 + $0x8] sm:$0xff] %v62_v25 }
  0x90   :  { %82 = vst [vmem:[#allocation2 + $0x18] sm:$0xff] %v67_v26 }
  0x92   :  { %v71_v27 = vpop.f32.mrf.mxu2  ;;  %v76_v28 = vpop.f32.mrf.mxu3 }
  0x93   :  { %v72_v29 = vadd.f32 %v115_v14, %v71_v27  ;;  %v77_v30 = vadd.f32 %v115_v14, %v76_v28 }
  0x95   :  { %84 = vst [vmem:[#allocation2 + $0x28] sm:$0xff] %v72_v29 }
  0x96   :  { %86 = vst [vmem:[#allocation2 + $0x38] sm:$0xff] %v77_v30 }
  0x97   :  { %99 = dma.vmem_to_hbm [thread:$0]  %s92_s2, 1024, %s94_s6, [#allocation3], %s143_s7, %s143_s7, %s144_s8  }
  0x98   :  { %140 = dma.done.wait [#allocation3], 1024  }
  0x99   :  { %141 = vsyncadd [#allocation3], 4294966272 }
  0x9a   :  { %104 = vsyncpa [#allocation3], 1 }

</bundles_post_ra>
